<compile_context>
chip_gen: v6e
topology: v6e:2x2x1
jax: 0.10.0
libtpu: 0.0.40
codegen_flags: <defaults>
</compile_context>

<pallas_src>
import functools
import math

import jax
import jax.numpy as jnp
from jax.experimental import pallas as pl
from jax.experimental.pallas import tpu as pltpu


# ----------------------------- Pallas kernel -------------------------------

def _bayes_mlp_kernel(x_ref, mw1_ref, b1_ref, mw2_ref, b2_ref, *rest,
                      samples_per_step, add_noise):
    """One grid step processes `samples_per_step` Monte-Carlo draws.

    Mean matmuls use the bf16 mu tensors directly; posterior noise enters as
    separate (pre-scaled) noise matmuls, so no W tensor is ever materialized.
    """
    if add_noise:
        nw1_ref, nb1_ref, nw2_ref, nb2_ref, o_ref = rest
    else:
        (o_ref,) = rest

    x = x_ref[...]                                  # (B, D_in) bf16
    mu_w2 = mw2_ref[...]                            # (H, D_pad) bf16
    b2 = b2_ref[...]                                # (1, D_pad) f32

    # fc1 mean term: identical for every sample in this step -> hoisted.
    h_mean = jnp.dot(x, mw1_ref[...],
                     preferred_element_type=jnp.float32) + b1_ref[...]

    for s in range(samples_per_step):               # unrolled sample loop
        h = h_mean
        if add_noise:
            # Noise matmul instead of materializing W = mu + sigma*eps.
            h = h + jnp.dot(x, nw1_ref[s], preferred_element_type=jnp.float32)
            h = h + nb1_ref[s]
        h = jnp.maximum(h, 0.0).astype(jnp.bfloat16)            # (B, H)

        out = jnp.dot(h, mu_w2, preferred_element_type=jnp.float32) + b2
        if add_noise:
            out = out + jnp.dot(h, nw2_ref[s],
                                preferred_element_type=jnp.float32)
            out = out + nb2_ref[s]
        o_ref[s] = out                              # lane-dense (B, D_pad)


# ------------------------------ Python wrapper ------------------------------

def sample_posterior_noise(key, *, n_samples, d_in, hidden, d_out,
                           sigma_w1, sigma_b1, sigma_w2, sigma_b2):
    """Draws pre-scaled posterior noise softplus(rho)*eps for both layers.

    sigma_* may be scalars or arrays broadcastable to the (in, out) weight /
    (1, out) bias layouts, so a trainable per-element rho is supported.
    """
    k1, k2, k3, k4 = jax.random.split(key, 4)
    nw1 = sigma_w1 * jax.random.normal(k1, (n_samples, d_in, hidden), jnp.float32)
    nb1 = sigma_b1 * jax.random.normal(k2, (n_samples, 1, hidden), jnp.float32)
    nw2 = sigma_w2 * jax.random.normal(k3, (n_samples, hidden, d_out), jnp.float32)
    nb2 = sigma_b2 * jax.random.normal(k4, (n_samples, 1, d_out), jnp.float32)
    return nw1, nb1, nw2, nb2


def bayesian_regressor_forward(x, mu_w1, mu_b1, mu_w2, mu_b2, *,
                               noise=None, n_samples=1, sample_blocks=None):
    """Runs Monte-Carlo forward passes of the Bayesian MLP.

    x      : (B, D_in)   float32
    mu_w1  : (D_in, H)   posterior mean of fc1.weight in (in, out) layout
    mu_b1  : (H,)        posterior mean of fc1.bias
    mu_w2  : (H, D_out)  posterior mean of fc2.weight in (in, out) layout
    mu_b2  : (D_out,)    posterior mean of fc2.bias
    noise  : optional pre-scaled posterior noise (nw1, nb1, nw2, nb2) with
             shapes (S,D_in,H), (S,1,H), (S,H,D_out), (S,1,D_out).
             None -> deterministic posterior-mean forward.
    returns (n_samples, B, D_out) float32
    """
    B, D_in = x.shape
    H = mu_w1.shape[1]
    D_out = mu_w2.shape[1]
    D_pad = pl.cdiv(D_out, 128) * 128               # lane-dense output width

    add_noise = noise is not None
    if add_noise:
        nw1, nb1, nw2, nb2 = noise
        n_samples = nw1.shape[0]

    if sample_blocks is None:
        # 2 grid steps keep the sample axis "parallel" for v7x megacore and
        # cost only one extra ~0.35us step on single-TC v5e/v6e.
        sample_blocks = 2 if (n_samples >= 2 and n_samples % 2 == 0) else 1
    assert n_samples % sample_blocks == 0
    s_per = n_samples // sample_blocks

    # bf16 MXU feeds (half the HBM/VMEM bytes); biases stay f32 on the VPU.
    x_bf = x.astype(jnp.bfloat16)
    w1_bf = mu_w1.astype(jnp.bfloat16)
    b1_row = mu_b1.reshape(1, H).astype(jnp.float32)
    w2_bf = jnp.zeros((H, D_pad), jnp.float32).at[:, :D_out].set(
        mu_w2).astype(jnp.bfloat16)
    b2_row = jnp.zeros((1, D_pad), jnp.float32).at[:, :D_out].set(
        mu_b2.reshape(1, D_out))

    const2 = lambda g: (0, 0)
    per_sample = lambda g: (g, 0, 0)

    in_specs = [
        pl.BlockSpec((B, D_in), const2),            # x        (VMEM-resident)
        pl.BlockSpec((D_in, H), const2),            # mu_w1
        pl.BlockSpec((1, H), const2),               # b1
        pl.BlockSpec((H, D_pad), const2),           # mu_w2 (padded)
        pl.BlockSpec((1, D_pad), const2),           # b2 (padded)
    ]
    args = [x_bf, w1_bf, b1_row, w2_bf, b2_row]

    if add_noise:
        nw1_bf = nw1.astype(jnp.bfloat16)
        nb1_f = nb1.astype(jnp.float32)
        # Only the D_out real columns carry noise; zero-pad to the lane-dense
        # width so the fc2 noise matmul lands directly in the padded slab.
        nw2_p = jnp.zeros((n_samples, H, D_pad), jnp.float32).at[
            :, :, :D_out].set(nw2).astype(jnp.bfloat16)
        nb2_p = jnp.zeros((n_samples, 1, D_pad), jnp.float32).at[
            :, :, :D_out].set(nb2)
        in_specs += [
            pl.BlockSpec((s_per, D_in, H), per_sample),
            pl.BlockSpec((s_per, 1, H), per_sample),
            pl.BlockSpec((s_per, H, D_pad), per_sample),
            pl.BlockSpec((s_per, 1, D_pad), per_sample),
        ]
        args += [nw1_bf, nb1_f, nw2_p, nb2_p]

    kernel = functools.partial(_bayes_mlp_kernel,
                               samples_per_step=s_per, add_noise=add_noise)

    out_padded = pl.pallas_call(
        kernel,
        out_shape=jax.ShapeDtypeStruct((n_samples, B, D_pad), jnp.float32),
        grid=(sample_blocks,),
        in_specs=in_specs,
        out_specs=pl.BlockSpec((s_per, B, D_pad), per_sample),
        compiler_params=pltpu.CompilerParams(
            dimension_semantics=("parallel",)),
    )(*args)

    # TODO(synk): consumers could take the lane-padded (S, B, 128) slab
    # directly and skip this (tiny) XLA slice.
    return out_padded[:, :, :D_out]


# --------------------------------- main -------------------------------------

if __name__ == "__main__":
    # fc1: input_dim -> 512, fc2: 512 -> output_dim (hidden fixed by module).
    batch, input_dim, hidden, output_dim = 8, 16, 512, 8
    n_samples = 4                       # Monte-Carlo posterior draws

    posterior_mu_scale = 0.1
    posterior_rho_init = -5.0
    sigma = math.log1p(math.exp(posterior_rho_init))    # softplus(rho) scalar

    key = jax.random.PRNGKey(0)
    k_x, k_w1, k_b1, k_w2, k_b2, k_eps = jax.random.split(key, 6)

    x = jax.random.normal(k_x, (batch, input_dim), dtype=jnp.float32)

    # Posterior means (PyTorch layout is (out, in); kernel wants (in, out)).
    mu_w1 = posterior_mu_scale * jax.random.normal(
        k_w1, (hidden, input_dim), dtype=jnp.float32)
    mu_b1 = posterior_mu_scale * jax.random.normal(
        k_b1, (hidden,), dtype=jnp.float32)
    mu_w2 = posterior_mu_scale * jax.random.normal(
        k_w2, (output_dim, hidden), dtype=jnp.float32)
    mu_b2 = posterior_mu_scale * jax.random.normal(
        k_b2, (output_dim,), dtype=jnp.float32)
    w1_t, w2_t = mu_w1.T, mu_w2.T

    # bf16-matched pure-JAX reference for a single posterior draw.
    def ref_forward(nw1_s, nb1_s, nw2_s, nb2_s):
        xb = x.astype(jnp.bfloat16)
        h = (jnp.dot(xb, w1_t.astype(jnp.bfloat16),
                     preferred_element_type=jnp.float32)
             + mu_b1.reshape(1, -1)
             + jnp.dot(xb, nw1_s.astype(jnp.bfloat16),
                       preferred_element_type=jnp.float32)
             + nb1_s)
        h = jnp.maximum(h, 0.0).astype(jnp.bfloat16)
        return (jnp.dot(h, w2_t.astype(jnp.bfloat16),
                        preferred_element_type=jnp.float32)
                + mu_b2.reshape(1, -1)
                + jnp.dot(h, nw2_s.astype(jnp.bfloat16),
                          preferred_element_type=jnp.float32)
                + nb2_s)

    # --- Check 1: deterministic posterior-mean forward (no noise).
    out_det = bayesian_regressor_forward(x, w1_t, mu_b1, w2_t, mu_b2,
                                         noise=None, n_samples=n_samples)
    out_det = jax.block_until_ready(out_det)
    z = jnp.zeros
    ref_det = ref_forward(z((input_dim, hidden)), z((1, hidden)),
                          z((hidden, output_dim)), z((1, output_dim)))
    assert out_det.shape == (n_samples, batch, output_dim)
    for s in range(n_samples):
        assert jnp.allclose(out_det[s], ref_det, atol=5e-3, rtol=5e-3)

    # --- Check 2: the real Bayesian forward (posterior noise applied).
    noise = sample_posterior_noise(
        k_eps, n_samples=n_samples, d_in=input_dim, hidden=hidden,
        d_out=output_dim, sigma_w1=sigma, sigma_b1=sigma,
        sigma_w2=sigma, sigma_b2=sigma)
    out = bayesian_regressor_forward(x, w1_t, mu_b1, w2_t, mu_b2, noise=noise)
    out = jax.block_until_ready(out)

    assert out.shape == (n_samples, batch, output_dim)
    assert bool(jnp.all(jnp.isfinite(out)))
    assert float(jnp.std(out, axis=0).max()) > 0.0   # draws actually differ
    nw1, nb1, nw2, nb2 = noise
    for s in range(n_samples):
        ref_s = ref_forward(nw1[s], nb1[s], nw2[s], nb2[s])
        assert jnp.allclose(out[s], ref_s, atol=1e-2, rtol=1e-2)

    print("KERNEL_OK")
</pallas_src>

<mosaic_0001>
module attributes {stable_mosaic.version = 11 : i64} {
  func.func @_bayes_mlp_kernel(%arg0: i32, %arg1: memref<8x16xbf16, #tpu.memory_space<vmem>>, %arg2: memref<16x512xbf16, #tpu.memory_space<vmem>>, %arg3: memref<1x512xf32, #tpu.memory_space<vmem>>, %arg4: memref<512x128xbf16, #tpu.memory_space<vmem>>, %arg5: memref<1x128xf32, #tpu.memory_space<vmem>>, %arg6: memref<2x8x128xf32, #tpu.memory_space<vmem>>) attributes {dimension_semantics = [#tpu.dimension_semantics<parallel>], iteration_bounds = array<i64: 2>, scalar_prefetch = 0 : i64, scratch_operands = 0 : i64, tpu.core_type = #tpu.core_type<tc>, window_params = [{pipeline_mode = #tpu.pipeline_mode<synchronous>, transform_indices = @transform_0, window_bounds = array<i64: 8, 16>}, {pipeline_mode = #tpu.pipeline_mode<synchronous>, transform_indices = @transform_1, window_bounds = array<i64: 16, 512>}, {pipeline_mode = #tpu.pipeline_mode<synchronous>, transform_indices = @transform_2, window_bounds = array<i64: 1, 512>}, {pipeline_mode = #tpu.pipeline_mode<synchronous>, transform_indices = @transform_3, window_bounds = array<i64: 512, 128>}, {pipeline_mode = #tpu.pipeline_mode<synchronous>, transform_indices = @transform_4, window_bounds = array<i64: 1, 128>}, {transform_indices = @transform_5, window_bounds = array<i64: 2, 8, 128>}]} {
    %c0 = arith.constant 0 : index
    %c0_0 = arith.constant 0 : index
    %0 = vector.load %arg1[%c0, %c0_0] : memref<8x16xbf16, #tpu.memory_space<vmem>>, vector<8x16xbf16>
    %c0_1 = arith.constant 0 : index
    %c0_2 = arith.constant 0 : index
    %1 = vector.load %arg4[%c0_1, %c0_2] : memref<512x128xbf16, #tpu.memory_space<vmem>>, vector<512x128xbf16>
    %c0_3 = arith.constant 0 : index
    %c0_4 = arith.constant 0 : index
    %2 = vector.load %arg5[%c0_3, %c0_4] : memref<1x128xf32, #tpu.memory_space<vmem>>, vector<1x128xf32>
    %c0_5 = arith.constant 0 : index
    %c0_6 = arith.constant 0 : index
    %3 = vector.load %arg2[%c0_5, %c0_6] : memref<16x512xbf16, #tpu.memory_space<vmem>>, vector<16x512xbf16>
    %cst = arith.constant dense<0.000000e+00> : vector<8x512xf32>
    %4 = tpu.matmul %0, %3, %cst {dimension_numbers = #tpu.dot_dimension_numbers<[1], [0], [0], [1], [0, 0, 1, 1], [], []>} : vector<8x16xbf16>, vector<16x512xbf16>, vector<8x512xf32> -> vector<8x512xf32>
    %c0_7 = arith.constant 0 : index
    %c0_8 = arith.constant 0 : index
    %5 = vector.load %arg3[%c0_7, %c0_8] : memref<1x512xf32, #tpu.memory_space<vmem>>, vector<1x512xf32>
    %6 = vector.broadcast %5 : vector<1x512xf32> to vector<8x512xf32>
    %7 = arith.addf %4, %6 : vector<8x512xf32>
    %cst_9 = arith.constant 0.000000e+00 : f32
    %8 = vector.broadcast %cst_9 : f32 to vector<8x512xf32>
    %9 = arith.maximumf %7, %8 : vector<8x512xf32>
    %10 = arith.truncf %9 : vector<8x512xf32> to vector<8x512xbf16>
    %cst_10 = arith.constant dense<0.000000e+00> : vector<8x128xf32>
    %11 = tpu.matmul %10, %1, %cst_10 {dimension_numbers = #tpu.dot_dimension_numbers<[1], [0], [0], [1], [0, 0, 1, 1], [], []>} : vector<8x512xbf16>, vector<512x128xbf16>, vector<8x128xf32> -> vector<8x128xf32>
    %12 = vector.broadcast %2 : vector<1x128xf32> to vector<8x128xf32>
    %13 = arith.addf %11, %12 : vector<8x128xf32>
    %c0_11 = arith.constant 0 : index
    %c0_12 = arith.constant 0 : index
    %c0_13 = arith.constant 0 : index
    %14 = vector.load %arg6[%c0_11, %c0_12, %c0_13] : memref<2x8x128xf32, #tpu.memory_space<vmem>>, vector<1x8x128xf32>
    %15 = vector.shape_cast %14 : vector<1x8x128xf32> to vector<8x128xf32>
    %16 = vector.shape_cast %13 : vector<8x128xf32> to vector<1x8x128xf32>
    tpu.vector_store %arg6[%c0_11, %c0_12, %c0_13], %16 {strides = array<i32>} : memref<2x8x128xf32, #tpu.memory_space<vmem>>, vector<1x8x128xf32>,
    %cst_14 = arith.constant 0.000000e+00 : f32
    %17 = vector.broadcast %cst_14 : f32 to vector<8x512xf32>
    %18 = arith.maximumf %7, %17 : vector<8x512xf32>
    %19 = arith.truncf %18 : vector<8x512xf32> to vector<8x512xbf16>
    %cst_15 = arith.constant dense<0.000000e+00> : vector<8x128xf32>
    %20 = tpu.matmul %19, %1, %cst_15 {dimension_numbers = #tpu.dot_dimension_numbers<[1], [0], [0], [1], [0, 0, 1, 1], [], []>} : vector<8x512xbf16>, vector<512x128xbf16>, vector<8x128xf32> -> vector<8x128xf32>
    %21 = vector.broadcast %2 : vector<1x128xf32> to vector<8x128xf32>
    %22 = arith.addf %20, %21 : vector<8x128xf32>
    %c1 = arith.constant 1 : index
    %c0_16 = arith.constant 0 : index
    %c0_17 = arith.constant 0 : index
    %23 = vector.load %arg6[%c1, %c0_16, %c0_17] : memref<2x8x128xf32, #tpu.memory_space<vmem>>, vector<1x8x128xf32>
    %24 = vector.shape_cast %23 : vector<1x8x128xf32> to vector<8x128xf32>
    %25 = vector.shape_cast %22 : vector<8x128xf32> to vector<1x8x128xf32>
    tpu.vector_store %arg6[%c1, %c0_16, %c0_17], %25 {strides = array<i32>} : memref<2x8x128xf32, #tpu.memory_space<vmem>>, vector<1x8x128xf32>,
    return
  }
  func.func @transform_0(%arg0: i32) -> (i32, i32) {
    %c0_i32 = arith.constant 0 : i32
    %c0_i32_0 = arith.constant 0 : i32
    %c0_i32_1 = arith.constant 0 : i32
    return %c0_i32, %c0_i32_0 : i32, i32
  }
  func.func @transform_1(%arg0: i32) -> (i32, i32) {
    %c0_i32 = arith.constant 0 : i32
    %c0_i32_0 = arith.constant 0 : i32
    %c0_i32_1 = arith.constant 0 : i32
    return %c0_i32, %c0_i32_0 : i32, i32
  }
  func.func @transform_2(%arg0: i32) -> (i32, i32) {
    %c0_i32 = arith.constant 0 : i32
    %c0_i32_0 = arith.constant 0 : i32
    %c0_i32_1 = arith.constant 0 : i32
    return %c0_i32, %c0_i32_0 : i32, i32
  }
  func.func @transform_3(%arg0: i32) -> (i32, i32) {
    %c0_i32 = arith.constant 0 : i32
    %c0_i32_0 = arith.constant 0 : i32
    %c0_i32_1 = arith.constant 0 : i32
    return %c0_i32, %c0_i32_0 : i32, i32
  }
  func.func @transform_4(%arg0: i32) -> (i32, i32) {
    %c0_i32 = arith.constant 0 : i32
    %c0_i32_0 = arith.constant 0 : i32
    %c0_i32_1 = arith.constant 0 : i32
    return %c0_i32, %c0_i32_0 : i32, i32
  }
  func.func @transform_5(%arg0: i32) -> (i32, i32, i32) {
    %c0_i32 = arith.constant 0 : i32
    %c0_i32_0 = arith.constant 0 : i32
    %c0_i32_1 = arith.constant 0 : i32
    return %arg0, %c0_i32, %c0_i32_0 : i32, i32, i32
  }
}

</mosaic_0001>

<bundles_post_ra>
// kernel: tpu_custom_call.1
= control target key start
LH: loop header
LB: loop body
LE: loop exit
PB: predicated region body
PF: predicated region fallthrough
CT: control target
= control target key end

     0   :  { %10 = vsyncpa [#allocation3], 0  ;;  %s1460_s0 = inlined_call_operand.hbm [shape: bf16[8,16], index: 0, kind: input, shape index: {}]   ;;  %s1461_s1 = inlined_call_operand.hbm [shape: bf16[16,512], index: 1, kind: input, shape index: {}]   ;;  %s1462_s2 = inlined_call_operand.hbm [shape: f32[1,512], index: 2, kind: input, shape index: {}]   ;;  %s1463_s3 = inlined_call_operand.hbm [shape: bf16[512,128], index: 3, kind: input, shape index: {}]   ;;  %s1464_s4 = inlined_call_operand.vmem [shape: f32[1,128], index: 4, kind: input, shape index: {}]   ;;  %s1465_s5 = inlined_call_operand.hbm [shape: f32[4,8,128], index: 5, kind: output, shape index: {}]  }
   0x1   :  { %11 = vsyncpa [#allocation6], 0 }
   0x2   :  { %12 = vsyncpa [#allocation9], 0 }
   0x3   :  { %13 = vsyncpa [#allocation4], 0 }
   0x4   :  { %15 = vsyncpa [#allocation4 + $0x1], 0  ;;  %s1299_s18 = smov 0   ;;  %s1301_s19 = smov 0  }
   0x5   :  { %s1303_s20 = smov 0   ;;  %s1305_s21 = smov 0  }
   0x6 LB: > { %s1320_s22 = sadd.s32 4294967295, %s1255_s21   ;;  %s852_s23 = sadd.s32 4294967294, %s1255_s21   ;;  %s1255_s21 = sphi %s1305_s21, %s1483_s21   ;;  %s1251_s20 = sphi %s1303_s20, %s1482_s20   ;;  %s1247_s19 = sphi %s1301_s19, %s1481_s19   ;;  %s1243_s18 = sphi %s1299_s18, %s1480_s18  }
   0x7   : > { %s1324_s24 = sadd.s32 1, %s1255_s21   ;;  %s133_s25 = sadd.s32 1, %s1251_s20 }
   0x8   : > { %s130_s26 = ssub.s32 %s1255_s21, %s1324_s24  ;;  %p143_p0 = scmp.ne.s32.totalorder %s1251_s20, %s1247_s19 }
   0x9   : > { %p131_p1 = scmp.eq.s32.totalorder %s130_s26, 0  ;;  %p144_p2 = scmp.eq.s32.totalorder %s1320_s22, 1 }
   0xa   : > { %p149_p3 = scmp.ne.s32.totalorder %s1247_s19, %s1243_s18  ;;  %p150_p4 = scmp.eq.s32.totalorder %s852_s23, 1 }
   0xb   : > { %s1335_s27 = scalar_select %p131_p1, %s1251_s20, %s133_s25  }
   0xc   : > { %p1337_p5 = por %p144_p2, %p143_p0  ;;  %p1341_p6 = por %p150_p4, %p149_p3 }
   0xd   : > { %p853_p7 = scmp.ge.s32.totalorder %s1255_s21, 1  ;;  %p157_p8 = scmp.lt.s32.totalorder %s1255_s21, 3 }
   0xe   : > { %s1468_s28 = scalar_select %p1337_p5, 1, 0 }
   0xf   : > { %s1469_s29 = scalar_select %p1341_p6, 1, 0 }
  0x10   : > { %p1466_p9 = scmp.eq.s32.totalorder %s1320_s22, 0  ;;  %p1348_p10 = pnand %p853_p7, %p157_p8 }
  0x11   : > { %s1257_s6 = smov [#allocation5]   ;;  %s1258_s9 = smov [#allocation2]  }
  0x12   : > { %s180_s7 = sshll.u32 %s1257_s6, 4  ;;  %p972_p11 = pneg %p1348_p10  ;;  %s181_s7 = int_to_ptr.vmem [resolvable:$true] %s180_s7 }
  0x13   : > { %s170_s10 = sshll.u32 %s1258_s9, 4  ;;  %s1259_s11 = smov [#allocation7]   ;;  %s171_s10 = int_to_ptr.vmem [resolvable:$true] %s170_s10 }
  0x14   : > { %p1356_p12 = pnand %p1466_p9, %p972_p11  ;;  %s194_s12 = sshll.u32 %s1259_s11, 4  ;;  %s195_s12 = int_to_ptr.vmem [resolvable:$true] %s194_s12 }
  0x15   : > { %s1090_s13 = scalar_lea.vmem %s181_s7, 512  ;;  %p1098_p3 = scmp.lt.s32.totalorder %s181_s7, %s181_s7 }
  0x16   : > { %p1081_p13 = pneg %p1356_p12  ;;  %p1091_p0 = scmp.ne.s32.totalorder %s181_s7, %s1090_s13 }
  0x17   : > { %p1099_p4 = scmp.lt.s32.totalorder %s1090_s13, %s1090_s13 }
  0x18   : > { %p1093_p1 = pnand %p1091_p0, %p1081_p13 }
  0x19   : > { %p1100_p7 = por %p1099_p4, %p1098_p3 }
  0x1a   : > { %p1094_p2 = pneg %p1093_p1 }
  0x1c   : > { %p1101_p8 = pnand %p1100_p7, %p1094_p2 }
  0x1e   : > { %1104 = shalt.err (!%p1101_p8)
}
  0x1f   : > { %s1260_s14 = smov 256   ;;  %s1261_s15 = smov 16  }
  0x20   : > { %978 = dma.hbm_to_vmem [thread:$0]  (!%p1356_p12), %s1461_s1, 512, %s181_s7, [#allocation6], %s1260_s14, %s1260_s14, %s1261_s15  }
  0x21   : > { %s1116_s23 = scalar_lea.vmem %s171_s10, 64  ;;  %p1124_p9 = scmp.lt.s32.totalorder %s171_s10, %s171_s10 }
  0x22   : > { %p1117_p11 = scmp.ne.s32.totalorder %s171_s10, %s1116_s23  ;;  %p1125_p6 = scmp.lt.s32.totalorder %s1116_s23, %s1116_s23 }
  0x24   : > { %p1119_p0 = pnand %p1117_p11, %p1081_p13  ;;  %p1126_p3 = por %p1125_p6, %p1124_p9 }
  0x26   : > { %p1120_p1 = pneg %p1119_p0 }
  0x28   : > { %p1127_p2 = pnand %p1126_p3, %p1120_p1 }
  0x2a   : > { %1130 = shalt.err (!%p1127_p2)
}
  0x2b   : > { %975 = dma.hbm_to_vmem [thread:$0]  (!%p1356_p12), %s1460_s0, 64, %s171_s10, [#allocation3]  }
  0x2c   : > { %s1142_s6 = scalar_lea.vmem %s195_s12, 64  ;;  %p1150_p11 = scmp.lt.s32.totalorder %s195_s12, %s195_s12 }
  0x2d   : > { %p1143_p4 = scmp.ne.s32.totalorder %s195_s12, %s1142_s6  ;;  %p1151_p0 = scmp.lt.s32.totalorder %s1142_s6, %s1142_s6 }
  0x2f   : > { %p1145_p7 = pnand %p1143_p4, %p1081_p13  ;;  %p1152_p5 = por %p1151_p0, %p1150_p11 }
  0x31   : > { %p1146_p8 = pneg %p1145_p7 }
  0x33   : > { %p1153_p6 = pnand %p1152_p5, %p1146_p8 }
  0x35   : > { %1156 = shalt.err (!%p1153_p6)
}
  0x36   : > { %981 = dma.hbm_to_vmem [thread:$0]  (!%p1356_p12), %s1462_s2, 64, %s195_s12, [#allocation6]  }
  0x37   : > { %s1262_s10 = smov [#allocation8]  }
  0x38   : > { %s204_s11 = sshll.u32 %s1262_s10, 4  ;;  %s205_s11 = int_to_ptr.vmem [resolvable:$true] %s204_s11 }
  0x39   : > { %s1168_s13 = scalar_lea.vmem %s205_s11, 4096  ;;  %p1176_p2 = scmp.lt.s32.totalorder %s205_s11, %s205_s11 }
  0x3a   : > { %p1169_p9 = scmp.ne.s32.totalorder %s205_s11, %s1168_s13  ;;  %p1177_p4 = scmp.lt.s32.totalorder %s1168_s13, %s1168_s13 }
  0x3c   : > { %p1171_p1 = pnand %p1169_p9, %p1081_p13  ;;  %p1178_p5 = por %p1177_p4, %p1176_p2 }
  0x3e   : > { %p1172_p3 = pneg %p1171_p1 }
  0x40   : > { %p1179_p7 = pnand %p1178_p5, %p1172_p3 }
  0x42   : > { %1182 = shalt.err (!%p1179_p7)
}
  0x43   : > { %s1263_s14 = smov 64   ;;  %s1264_s15 = smov 4  }
  0x44   : > { %984 = dma.hbm_to_vmem [thread:$0]  (!%p1356_p12), %s1463_s3, 4096, %s205_s11, [#allocation9], %s1263_s14, %s1263_s14, %s1264_s15  }
  0x45   : > { %223 = sbr.rel (%p1348_p10) target bundleno = 505 (0x1f9), region = 40  ;;  %p1472_p8 = scmp.eq.s32.totalorder (!%p1348_p10), %s1320_s22, 0 }
  0x4a   : > { %1226 = dma.done.wait (%p1472_p8), [#allocation3], 64   ;;  %p1473_p13 = pmov %p1472_p8 }
  0x4b   : > { %p1474_p11 = pmov %p1472_p8 }
  0x4c   : > { %1228 = vsyncadd (%p1473_p13), [#allocation3], 4294967232 }
  0x4d   : > { %1230 = dma.done.wait (%p1474_p11), [#allocation6], 576   ;;  %p1475_p0 = pmov %p1472_p8 }
  0x4f   : > { %1232 = vsyncadd (%p1475_p0), [#allocation6], 4294966720  ;;  %p1476_p6 = pmov %p1475_p0 }
  0x50   : > { %p1477_p12 = pmov %p1475_p0 }
  0x51   : > { %1234 = dma.done.wait (%p1476_p6), [#allocation9], 4096  }
  0x52   : > { %1236 = vsyncadd (%p1477_p12), [#allocation9], 4294963200  ;;  %v1265_v0 = vmov 0   ;;  %v1041_v1 = vld [vmem:[#allocation5 + $0x4] ss:$16 sps:$4 sm:$0xff]   ;;  %v1047_v6 = vld [vmem:[#allocation8 + $0x78] sm:$0xff]   ;;  %v332_v38 = vlaneseq }
  0x53   : > { %408 = vmatprep.mubr.bf16.mxu0 %v1265_v0  ;;  %449 = vmatprep.mubr.bf16.mxu1 %v1265_v0  ;;  %v1043_v2 = vld [vmem:[#allocation5 + $0xc] ss:$16 sps:$4 sm:$0xff]   ;;  %v1045_v3 = vld [vmem:[#allocation5] ss:$16 sps:$4 sm:$0xff]   ;;  %v1046_v4 = vld [vmem:[#allocation5 + $0x8] ss:$16 sps:$4 sm:$0xff]  }
  0x54   : > { %390 = vmatprep.subr.bf16.mxu0 %v1041_v1  ;;  %v260_v5 = vld [vmem:[#allocation2] sm:$0xf]  ;;  %431 = vmatprep.subr.bf16.mxu1 %v1043_v2  ;;  %vm372_vm0 = vcmask 130048   ;;  %v1051_v10 = vld [vmem:[#allocation8 + $0x70] sm:$0xff]   ;;  %v1055_v14 = vld [vmem:[#allocation8 + $0x68] sm:$0xff]   ;;  %v333_v39 = vshrl.u32 %v332_v38, 7 }
  0x55   : > { %391 = vmatpush1.bf16.msra.mxu0 %v1045_v3  ;;  %432 = vmatpush1.bf16.msra.mxu1 %v1046_v4  ;;  %v1048_v7 = vld [vmem:[#allocation8 + $0xf8] sm:$0xff]   ;;  %v1052_v11 = vld [vmem:[#allocation8 + $0xf0] sm:$0xff]   ;;  %v1056_v15 = vld [vmem:[#allocation8 + $0xe8] sm:$0xff]   ;;  %s255_s30 = sand.u32 1, %s1247_s19   ;;  %s909_s6 = sshll.u32 %s1320_s22, 8 }
  0x56   : > { %910 = vmatprep.subr.bf16.mxu0 %v1047_v6  ;;  %v1049_v8 = vld [vmem:[#allocation8 + $0x38] sm:$0xff]   ;;  %932 = vmatprep.subr.bf16.mxu1 %v1048_v7  ;;  %v1053_v12 = vld [vmem:[#allocation8 + $0x30] sm:$0xff]   ;;  %v1057_v16 = vld [vmem:[#allocation8 + $0x28] sm:$0xff]   ;;  %v334_v40 = vsub.s32 0, %v333_v39  ;;  %v342_v41 = vsub.s32 2, %v333_v39  ;;  %v338_v43 = vsub.s32 1, %v333_v39  ;;  %s1418_s10 = scalar_lea.hbm %s1465_s5, %s909_s6 }
  0x57   : > { %v1050_v9 = vld [vmem:[#allocation8 + $0xb8] sm:$0xff]   ;;  %v1054_v13 = vld [vmem:[#allocation8 + $0xb0] sm:$0xff]   ;;  %v1058_v17 = vld [vmem:[#allocation8 + $0xa8] sm:$0xff]   ;;  %v346_v44 = vsub.s32 3, %v333_v39  ;;  %s863_s8 = sshll.u32 %s255_s30, 4  ;;  %s1420_s22 = scalar_lea.sflag [#allocation4], %s255_s30 }
  0x58   : > { %868 = vmatmul.mubr.msk.bf16.vlgmr.msra.gmra.mxu0 %vm372_vm0, %v260_v5  ;;  %869 = vmatmul.mubr.msk.bf16.vlgmr.msra.gmra.mxu1 %vm372_vm0, %v260_v5  ;;  %v1059_v18 = vld [vmem:[#allocation8 + $0x60] sm:$0xff]   ;;  %v1063_v22 = vld [vmem:[#allocation8 + $0x58] sm:$0xff]   ;;  %v1067_v26 = vld [vmem:[#allocation8 + $0x50] sm:$0xff]   ;;  %s257_s25 = scalar_lea.vmem [#allocation10], %s863_s8  ;;  %p1478_p9 = scmp.ne.s32.totalorder %s1468_s28, 0 }
  0x59   : > { %911 = vmatpush3.bf16.msra.mxu0 %v1049_v8  ;;  %933 = vmatpush3.bf16.msra.mxu1 %v1050_v9  ;;  %v1060_v19 = vld [vmem:[#allocation8 + $0xe0] sm:$0xff]   ;;  %v1064_v23 = vld [vmem:[#allocation8 + $0xd8] sm:$0xff]   ;;  %v1068_v27 = vld [vmem:[#allocation8 + $0xd0] sm:$0xff]   ;;  %s761_s26 = sshll.u32 %s257_s25, 4  ;;  %s1266_s13 = smov [#allocation10]   ;;  %s1413_s26 = int_to_ptr.vmem [resolvable:$true] %s761_s26 }
  0x5a   : > { %912 = vmatprep.subr.bf16.mxu0 %v1051_v10  ;;  %934 = vmatprep.subr.bf16.mxu1 %v1052_v11  ;;  %v1061_v20 = vld [vmem:[#allocation8 + $0x20] sm:$0xff]   ;;  %v1065_v24 = vld [vmem:[#allocation8 + $0x18] sm:$0xff]   ;;  %v1069_v28 = vld [vmem:[#allocation8 + $0x10] sm:$0xff]   ;;  %s1183_s11 = scalar_lea.vmem %s1413_s26, 256  ;;  %s1187_s14 = sshll.u32 %s1266_s13, 4  ;;  %s1188_s14 = int_to_ptr.vmem [resolvable:$false] %s1187_s14 }
  0x5b   : > { %v1062_v21 = vld [vmem:[#allocation8 + $0xa0] sm:$0xff]   ;;  %v1066_v25 = vld [vmem:[#allocation8 + $0x98] sm:$0xff]   ;;  %v1070_v29 = vld [vmem:[#allocation8 + $0x90] sm:$0xff]   ;;  %p1184_p10 = scmp.ne.s32.totalorder %s1413_s26, %s1183_s11  ;;  %s1189_s15 = scalar_lea.vmem %s1188_s14, 512 }
  0x5c   : > { %v1071_v30 = vld [vmem:[#allocation8 + $0x48] sm:$0xff]   ;;  %v1075_v34 = vld [vmem:[#allocation8 + $0x40] sm:$0xff]   ;;  %v330_v42 = vld [vmem:[#allocation7] sm:$0xf]  ;;  %p1190_p2 = scmp.lt.s32.totalorder %s1413_s26, %s1188_s14  ;;  %p1191_p4 = scmp.lt.s32.totalorder %s1189_s15, %s1183_s11 }
  0x5d   : > { %913 = vmatpush3.bf16.msra.mxu0 %v1053_v12  ;;  %935 = vmatpush3.bf16.msra.mxu1 %v1054_v13  ;;  %v1072_v31 = vld [vmem:[#allocation8 + $0xc8] sm:$0xff]   ;;  %v1076_v35 = vld [vmem:[#allocation8 + $0xc0] sm:$0xff]   ;;  %v335_v45 = vrot.slane %v330_v42, %v334_v40  ;;  %v343_v46 = vrot.slane %v330_v42, %v342_v41  ;;  %v339_v47 = vrot.slane %v330_v42, %v338_v43  ;;  %v870_v7 = vld [vmem:[%s1464_s4] ss:$0 sm:$0xff]  ;;  %p1185_p1 = pnand %p1184_p10, %p1478_p9 }
  0x5e   : > { %914 = vmatprep.subr.bf16.mxu0 %v1055_v14  ;;  %936 = vmatprep.subr.bf16.mxu1 %v1056_v15  ;;  %v1073_v32 = vld [vmem:[#allocation8 + $0x8] sm:$0xff]   ;;  %v1077_v36 = vld [vmem:[#allocation8] sm:$0xff]   ;;  %v347_v48 = vrot.slane %v330_v42, %v346_v44  ;;  %p1192_p5 = por %p1191_p4, %p1190_p2 }
  0x5f   : > { %v1074_v33 = vld [vmem:[#allocation8 + $0x88] sm:$0xff]   ;;  %v1078_v37 = vld [vmem:[#allocation8 + $0x80] sm:$0xff]   ;;  %p1186_p3 = pneg %p1185_p1 }
  0x61   : > { %915 = vmatpush3.bf16.msra.mxu0 %v1057_v16  ;;  %937 = vmatpush3.bf16.msra.mxu1 %v1058_v17  ;;  %p1193_p7 = pnand %p1192_p5, %p1186_p3 }
  0x62   : > { %916 = vmatprep.subr.bf16.mxu0 %v1059_v18  ;;  %938 = vmatprep.subr.bf16.mxu1 %v1060_v19 }
  0x65   : > { %917 = vmatpush3.bf16.msra.mxu0 %v1061_v20  ;;  %939 = vmatpush3.bf16.msra.mxu1 %v1062_v21 }
  0x66   : > { %918 = vmatprep.subr.bf16.mxu0 %v1063_v22  ;;  %940 = vmatprep.subr.bf16.mxu1 %v1064_v23 }
  0x69   : > { %919 = vmatpush3.bf16.msra.mxu0 %v1065_v24  ;;  %941 = vmatpush3.bf16.msra.mxu1 %v1066_v25 }
  0x6a   : > { %920 = vmatprep.subr.bf16.mxu0 %v1067_v26  ;;  %942 = vmatprep.subr.bf16.mxu1 %v1068_v27 }
  0x6d   : > { %921 = vmatpush3.bf16.msra.mxu0 %v1069_v28  ;;  %943 = vmatpush3.bf16.msra.mxu1 %v1070_v29 }
  0x6e   : > { %922 = vmatprep.subr.bf16.mxu0 %v1071_v30  ;;  %944 = vmatprep.subr.bf16.mxu1 %v1072_v31 }
  0x71   : > { %923 = vmatpush3.bf16.msra.mxu0 %v1073_v32  ;;  %945 = vmatpush3.bf16.msra.mxu1 %v1074_v33 }
  0x72   : > { %924 = vmatprep.subr.bf16.mxu0 %v1075_v34  ;;  %946 = vmatprep.subr.bf16.mxu1 %v1076_v35 }
  0x75   : > { %925 = vmatpush3.bf16.msra.mxu0 %v1077_v36  ;;  %947 = vmatpush3.bf16.msra.mxu1 %v1078_v37 }
 0x118   : > { %v410_v49 = vpop.f32.mrf.mxu0  ;;  %v451_v50 = vpop.f32.mrf.mxu1 }
 0x119   : > { %v411_v51 = vadd.f32 %v410_v49, %v335_v45  ;;  %v452_v52 = vadd.f32 %v451_v50, %v343_v46 }
 0x11a   : > { %v412_v53 = vpop.f32.mrf.mxu0  ;;  %v453_v54 = vpop.f32.mrf.mxu1 }
 0x11b   : > { %v460_v55 = vmax.f32 %v452_v52, 0.0  ;;  %v413_v56 = vadd.f32 %v412_v53, %v339_v47  ;;  %v454_v57 = vadd.f32 %v453_v54, %v347_v48  ;;  %v458_v58 = vmax.f32 %v411_v51, 0.0 }
 0x11c   : > { %v414_v59 = vpop.f32.mrf.mxu0  ;;  %v455_v60 = vpop.f32.mrf.mxu1 }
 0x11d   : > { %v459_v61 = vmax.f32 %v413_v56, 0.0  ;;  %v461_v62 = vmax.f32 %v454_v57, 0.0  ;;  %v464_v63 = vpack.c.bf16 %v460_v55, %v460_v55  ;;  %v462_v4 = vpack.c.bf16 %v458_v58, %v458_v58 }
 0x11e   : > { %v415_v0 = vpop.f32.mrf.mxu0  ;;  %v456_v1 = vpop.f32.mrf.mxu1 }
 0x11f   : > { %v463_v2 = vpack.c.bf16 %v459_v61, %v459_v61  ;;  %v465_v3 = vpack.c.bf16 %v461_v62, %v461_v62 }
 0x121   : > { %696 = vmatprep.mubr.bf16.mxu0 %v463_v2  ;;  %736 = vmatprep.mubr.bf16.mxu1 %v465_v3 }
 0x122   : > { %697 = vmatmul.mubr.bf16.vlgmr.msra.gmra.mxu0 %v462_v4  ;;  %737 = vmatmul.mubr.bf16.vlgmr.msra.gmra.mxu1 %v464_v63 }
 0x1e2   : > { %v926_v5 = vpop.f32.mrf.mxu0  ;;  %v948_v6 = vpop.f32.mrf.mxu1 }
 0x1e4   : > { %v927_v8 = vpop.f32.mrf.mxu0  ;;  %v949_v9 = vpop.f32.mrf.mxu1 }
 0x1e5   : > { %v928_v10 = vadd.f32 %v927_v8, %v926_v5  ;;  %v950_v14 = vadd.f32 %v949_v9, %v948_v6 }
 0x1e6   : > { %v929_v11 = vpop.f32.mrf.mxu0  ;;  %v951_v12 = vpop.f32.mrf.mxu1 }
 0x1e7   : > { %v699_v13 = vadd.f32 %v928_v10, %v870_v7 }
 0x1e8   : > { %v930_v15 = vpop.f32.mrf.mxu0  ;;  %v952_v16 = vpop.f32.mrf.mxu1 }
 0x1e9   : > { %v739_v17 = vadd.f32 %v950_v14, %v699_v13 }
 0x1eb   : > { %744 = vst [vmem:[%s257_s25] sm:$0xff] %v739_v17  ;;  %903 = vst [vmem:[%s257_s25 + $0x8] sm:$0xff] %v739_v17 }
 0x1ec   : > { %1196 = shalt.err (!%p1193_p7)
}
 0x1ed   : > { %s1197_s16 = scalar_lea.hbm %s1418_s10, 256  ;;  %s1201_s8 = scalar_lea.hbm %s1465_s5, 512 }
 0x1ee   : > { %p1198_p8 = scmp.ne.s32.totalorder %s1418_s10, %s1197_s16  ;;  %p1202_p0 = scmp.lt.s32.totalorder %s1418_s10, %s1465_s5 }
 0x1ef   : > { %p1203_p6 = scmp.lt.s32.totalorder %s1201_s8, %s1197_s16 }
 0x1f0   : > { %p1199_p13 = pnand %p1198_p8, %p1478_p9 }
 0x1f1   : > { %p1204_p12 = por %p1203_p6, %p1202_p0 }
 0x1f2   : > { %p1200_p11 = pneg %p1199_p13 }
 0x1f4   : > { %p1205_p10 = pnand %p1204_p12, %p1200_p11 }
 0x1f6   : > { %1208 = shalt.err (!%p1205_p10)
}
 0x1f7   : > { %s1267_s25 = smov 128   ;;  %s1268_s6 = smov 8  }
 0x1f8   : > { %970 = dma.vmem_to_hbm [thread:$0]  (%p1478_p9), %s1413_s26, 256, %s1418_s10, %s1420_s22, %s1267_s25, %s1267_s25, %s1268_s6  }
 0x1f9 PF: > { %p997_p1 = scmp.ge.s32.totalorder %s1255_s21, 2  ;;  %s776_s7 = sand.u32 1, %s1243_s18  }
 0x1fa   : > { %p1479_p3 = scmp.ne.s32.totalorder %s1469_s29, 0  ;;  %s777_s9 = scalar_lea.sflag [#allocation4], %s776_s7 }
 0x1fc   : > { %p986_p2 = pnand %p997_p1, %p1479_p3 }
 0x1fe   : > { %p987_p4 = pneg %p986_p2 }
 0x200   : > { %1238 = dma.done.wait (%p987_p4), %s777_s9, 256  }
 0x201   : > { %1240 = vsyncadd (%p987_p4), %s777_s9, 4294967040  ;;  %p18_p5 = scmp.ge.s32.totalorder %s1324_s24, 4   ;;  %s1480_s18 = smov %s1247_s19 }
 0x202   : > { %s1481_s19 = smov %s1251_s20  ;;  %s1482_s20 = smov %s1335_s27 }
 0x203   : > { %s1483_s21 = smov %s1324_s24  ;;  %20 = sbr.rel (!%p18_p5) target bundleno = 6 (0x6), region = 90 }
 0x208   :  { %782 = vsyncpa [#allocation3], 1 }
 0x209   :  { %784 = vsyncpa [#allocation3 + $0x1], 1 }
 0x20a   :  { %785 = vsyncpa [#allocation6], 1 }
 0x20b   :  { %786 = vsyncpa [#allocation9], 1 }
 0x20c   :  { %787 = vsyncpa [#allocation4], 1 }
 0x20d   :  { %789 = vsyncpa [#allocation4 + $0x1], 1 }

</bundles_post_ra>
